<compile_context>
chip_gen: v7x
topology: tpu7x:2x2x1
jax: 0.10.0
libtpu: 0.0.40
codegen_flags: <defaults>
</compile_context>

<pallas_src>
import functools

import jax
import jax.numpy as jnp
from jax.experimental import pallas as pl
from jax.experimental.pallas import tpu as pltpu


# ---------------------------------------------------------------------------
# Tile sizing
# ---------------------------------------------------------------------------
_TB_CAP = 8192        # large-batch lane-tile cap: ~552 B/lane/step -> ~4.5 MiB,
                      # fits default scoped VMEM on v5e (16 MiB) / v6e / v7x (32 MiB)
_ONE_STEP_MAX = 4096  # batches up to this many lanes run as a single grid step


def _batch_tile(batch, tile_b):
    """Pick the lane-tile width (always a multiple of 128)."""
    b_lanes = pl.cdiv(max(batch, 1), 128) * 128
    if tile_b is not None:
        # Round a user-supplied tile up to a multiple of 128 (lane constraint).
        tb = max(128, pl.cdiv(int(tile_b), 128) * 128)
        return min(tb, b_lanes)
    if b_lanes <= _ONE_STEP_MAX:
        return b_lanes                      # small/medium batch: ONE grid step
    # Large batch: at least 2 tiles (both TensorCores on v7x), capped so the
    # per-step VMEM footprint stays small on every generation.
    half = pl.cdiv(pl.cdiv(batch, 2), 128) * 128
    return min(_TB_CAP, half)


# ---------------------------------------------------------------------------
# Kernel
# ---------------------------------------------------------------------------
def _value_net_kernel(w1b_ref, w2_ref, b2_ref, xT_ref, out_ref, *, state_dim):
    # w1b_ref: (H, S+1) VMEM  — fused [W1 | b1] slab, resident across tiles
    # w2_ref:  (1, H)   VMEM  — fc2 weight row, resident across tiles
    # b2_ref:  (1, 1)   SMEM  — fc2 bias scalar
    # xT_ref:  (S, TB)  VMEM  — streamed batch tile (batch on the lane axis)
    # out_ref: (1, TB)  VMEM  — lane-dense output tile (unmasked vst)
    w1 = w1b_ref[:, :state_dim]          # (H, S)  static slice of resident slab
    b1 = w1b_ref[:, state_dim:]          # (H, 1)  broadcasts along lanes (batch)

    # fc1: (H, S) @ (S, TB) -> (H, TB) on the MXU, f32 accumulation.
    h = jnp.dot(w1, xT_ref[...], preferred_element_type=jnp.float32)
    h = jnp.maximum(h + b1, 0.0)         # bias + ReLU on the VPU

    # fc2: (1, H) @ (H, TB) -> (1, TB); output stays lane-dense.
    y = jnp.dot(w2_ref[...], h, preferred_element_type=jnp.float32)
    out_ref[...] = y + b2_ref[0, 0]


# ---------------------------------------------------------------------------
# One-time parameter plumbing (hoisted out of the per-forward hot path).
# Call this once whenever the PyTorch-layout parameters are created/updated.
# ---------------------------------------------------------------------------
def prepare_value_net_params(w1, b1, w2, b2):
    """w1:(H,S) b1:(H,) w2:(1,H) b2:(1,) -> (w1b, w2_row, b2_scalar)."""
    H, S = w1.shape
    w1b = jnp.concatenate(
        [w1.astype(jnp.float32), b1.reshape(H, 1).astype(jnp.float32)], axis=1
    )                                                   # (H, S+1) fused slab
    w2r = w2.reshape(1, H).astype(jnp.float32)          # (1, H)
    b2s = jnp.asarray(b2, jnp.float32).reshape(1, 1)    # (1, 1) SMEM scalar
    return w1b, w2r, b2s


# ---------------------------------------------------------------------------
# Forward
# ---------------------------------------------------------------------------
@functools.partial(jax.jit, static_argnames=("tile_b",))
def value_net_forward(params, x, *, tile_b=None):
    """ValueNet forward.

    params: output of prepare_value_net_params (built once, reused per call)
    x:      (B, S) float32
    returns (B, 1) float32
    """
    w1b, w2r, b2s = params
    B, S = x.shape
    H = w1b.shape[0]

    tb = _batch_tile(B, tile_b)
    num_tiles = pl.cdiv(B, tb)
    b_pad = num_tiles * tb

    # Layout plumbing only: batch onto the lane axis.  No zero-pad / scatter —
    # the ragged last block (if any) reads garbage lanes that are sliced off.
    xT = x.astype(jnp.float32).T                        # (S, B)

    yT = pl.pallas_call(
        functools.partial(_value_net_kernel, state_dim=S),
        out_shape=jax.ShapeDtypeStruct((1, b_pad), jnp.float32),
        grid=(num_tiles,),
        in_specs=[
            pl.BlockSpec((H, S + 1), lambda i: (0, 0)),            # resident slab
            pl.BlockSpec((1, H), lambda i: (0, 0)),                # resident fc2 row
            pl.BlockSpec(memory_space=pltpu.MemorySpace.SMEM),     # scalar fc2 bias
            pl.BlockSpec((S, tb), lambda i: (0, i)),               # streamed x^T
        ],
        out_specs=pl.BlockSpec((1, tb), lambda i: (0, i)),
        compiler_params=pltpu.CompilerParams(
            dimension_semantics=("parallel",)),                    # 2 TCs on v7x
    )(w1b, w2r, b2s, xT)

    # (1, B) lane-dense kernel output -> (B, 1) PyTorch-shaped result.
    return yT[:, :B].reshape(B, 1)


def reference_forward(x, w1, b1, w2, b2):
    h = jnp.maximum(x @ w1.T + b1, 0.0)
    return h @ w2.T + b2


if __name__ == "__main__":
    state_dim = 4       # CartPole-v1 observation dim
    hidden_dim = 128

    key = jax.random.PRNGKey(0)
    kx, k1, k2, k3, k4, kx2, kx3 = jax.random.split(key, 7)

    # PyTorch-native parameter layout: Linear(in, out).weight has shape (out, in).
    w1 = jax.random.uniform(k1, (hidden_dim, state_dim), jnp.float32, -0.5, 0.5)
    b1 = jax.random.uniform(k2, (hidden_dim,), jnp.float32, -0.5, 0.5)
    w2 = jax.random.uniform(k3, (1, hidden_dim), jnp.float32, -0.1, 0.1)
    b2 = jax.random.uniform(k4, (1,), jnp.float32, -0.1, 0.1)

    # One-time parameter preparation (hot path only runs the Pallas call).
    params = prepare_value_net_params(w1, b1, w2, b2)

    # Small batch: single 128-lane tile, single grid step.
    x_small = jax.random.normal(kx, (8, state_dim), dtype=jnp.float32)
    out_small = jax.block_until_ready(value_net_forward(params, x_small))
    ref_small = reference_forward(x_small, w1, b1, w2, b2)
    assert out_small.shape == (8, 1), out_small.shape
    assert jnp.allclose(out_small, ref_small, atol=1e-4, rtol=1e-4)

    # Medium batch, not a multiple of 128: still ONE grid step (tb = 512),
    # ragged lanes sliced off.
    x_mid = jax.random.normal(kx2, (389, state_dim), dtype=jnp.float32)
    out_mid = jax.block_until_ready(value_net_forward(params, x_mid))
    ref_mid = reference_forward(x_mid, w1, b1, w2, b2)
    assert out_mid.shape == (389, 1), out_mid.shape
    assert jnp.allclose(out_mid, ref_mid, atol=1e-4, rtol=1e-4)

    # Large batch: auto-split into >= 2 tiles (both TensorCores on v7x),
    # weights stay resident across tiles; last input block is ragged.
    x_big = jax.random.normal(kx3, (4500, state_dim), dtype=jnp.float32)
    out_big = jax.block_until_ready(value_net_forward(params, x_big))
    ref_big = reference_forward(x_big, w1, b1, w2, b2)
    assert out_big.shape == (4500, 1), out_big.shape
    assert jnp.allclose(out_big, ref_big, atol=1e-4, rtol=1e-4)

    print("KERNEL_OK")
</pallas_src>

<mosaic_0001>
module attributes {stable_mosaic.version = 11 : i64} {
  func.func @_value_net_kernel(%arg0: i32, %arg1: memref<128x5xf32, #tpu.memory_space<vmem>>, %arg2: memref<1x128xf32, #tpu.memory_space<vmem>>, %arg3: memref<1x1xf32, #tpu.memory_space<smem>>, %arg4: memref<4x128xf32, #tpu.memory_space<vmem>>, %arg5: memref<1x128xf32, #tpu.memory_space<vmem>>) attributes {dimension_semantics = [#tpu.dimension_semantics<parallel>], iteration_bounds = array<i64: 1>, scalar_prefetch = 0 : i64, scratch_operands = 0 : i64, tpu.core_type = #tpu.core_type<tc>, window_params = [{pipeline_mode = #tpu.pipeline_mode<synchronous>, transform_indices = @transform_0, window_bounds = array<i64: 128, 5>}, {pipeline_mode = #tpu.pipeline_mode<synchronous>, transform_indices = @transform_1, window_bounds = array<i64: 1, 128>}, {transform_indices = @transform_2, window_bounds = array<i64: 1, 1>}, {transform_indices = @transform_3, window_bounds = array<i64: 4, 128>}, {transform_indices = @transform_4, window_bounds = array<i64: 1, 128>}]} {
    %c0 = arith.constant 0 : index
    %c0_0 = arith.constant 0 : index
    %0 = vector.load %arg1[%c0, %c0_0] : memref<128x5xf32, #tpu.memory_space<vmem>>, vector<128x4xf32>
    %c0_1 = arith.constant 0 : index
    %c4 = arith.constant 4 : index
    %1 = vector.load %arg1[%c0_1, %c4] : memref<128x5xf32, #tpu.memory_space<vmem>>, vector<128x1xf32>
    %c0_2 = arith.constant 0 : index
    %c0_3 = arith.constant 0 : index
    %2 = vector.load %arg4[%c0_2, %c0_3] : memref<4x128xf32, #tpu.memory_space<vmem>>, vector<4x128xf32>
    %cst = arith.constant dense<0.000000e+00> : vector<128x128xf32>
    %3 = tpu.matmul %0, %2, %cst {dimension_numbers = #tpu.dot_dimension_numbers<[1], [0], [0], [1], [0, 0, 1, 1], [], []>} : vector<128x4xf32>, vector<4x128xf32>, vector<128x128xf32> -> vector<128x128xf32>
    %4 = vector.broadcast %1 : vector<128x1xf32> to vector<128x128xf32>
    %5 = arith.addf %3, %4 : vector<128x128xf32>
    %cst_4 = arith.constant 0.000000e+00 : f32
    %6 = vector.broadcast %cst_4 : f32 to vector<128x128xf32>
    %7 = arith.maximumf %5, %6 : vector<128x128xf32>
    %c0_5 = arith.constant 0 : index
    %c0_6 = arith.constant 0 : index
    %8 = vector.load %arg2[%c0_5, %c0_6] : memref<1x128xf32, #tpu.memory_space<vmem>>, vector<1x128xf32>
    %cst_7 = arith.constant dense<0.000000e+00> : vector<1x128xf32>
    %9 = tpu.matmul %8, %7, %cst_7 {dimension_numbers = #tpu.dot_dimension_numbers<[1], [0], [0], [1], [0, 0, 1, 1], [], []>} : vector<1x128xf32>, vector<128x128xf32>, vector<1x128xf32> -> vector<1x128xf32>
    %c0_8 = arith.constant 0 : index
    %c0_9 = arith.constant 0 : index
    %10 = memref.load %arg3[%c0_8, %c0_9] : memref<1x1xf32, #tpu.memory_space<smem>>
    %11 = vector.broadcast %10 : f32 to vector<1x128xf32>
    %12 = arith.addf %9, %11 : vector<1x128xf32>
    %c0_10 = arith.constant 0 : index
    %c0_11 = arith.constant 0 : index
    %13 = vector.load %arg5[%c0_10, %c0_11] : memref<1x128xf32, #tpu.memory_space<vmem>>, vector<1x128xf32>
    tpu.vector_store %arg5[%c0_10, %c0_11], %12 {strides = array<i32>} : memref<1x128xf32, #tpu.memory_space<vmem>>, vector<1x128xf32>,
    return
  }
  func.func @transform_0(%arg0: i32) -> (i32, i32) {
    %c0_i32 = arith.constant 0 : i32
    %c0_i32_0 = arith.constant 0 : i32
    %c0_i32_1 = arith.constant 0 : i32
    return %c0_i32, %c0_i32_0 : i32, i32
  }
  func.func @transform_1(%arg0: i32) -> (i32, i32) {
    %c0_i32 = arith.constant 0 : i32
    %c0_i32_0 = arith.constant 0 : i32
    %c0_i32_1 = arith.constant 0 : i32
    return %c0_i32, %c0_i32_0 : i32, i32
  }
  func.func @transform_2(%arg0: i32) -> (i32, i32) {
    %c0_i32 = arith.constant 0 : i32
    %c0_i32_0 = arith.constant 0 : i32
    %c0_i32_1 = arith.constant 0 : i32
    return %c0_i32, %c0_i32_0 : i32, i32
  }
  func.func @transform_3(%arg0: i32) -> (i32, i32) {
    %c0_i32 = arith.constant 0 : i32
    %c0_i32_0 = arith.constant 0 : i32
    return %c0_i32, %arg0 : i32, i32
  }
  func.func @transform_4(%arg0: i32) -> (i32, i32) {
    %c0_i32 = arith.constant 0 : i32
    %c0_i32_0 = arith.constant 0 : i32
    return %c0_i32, %arg0 : i32, i32
  }
}

</mosaic_0001>

<bundles_post_ra>
// kernel: value_net_forward.1
= control target key start
LH: loop header
LB: loop body
LE: loop exit
PB: predicated region body
PF: predicated region fallthrough
CT: control target
= control target key end

     0   :  { %vm148_vm0 = vcmask 1043456   ;;  %vm115_vm1 = vcmask 31744   ;;  %v533_v3 = vmov 4   ;;  %v534_v18 = vmov 0.0|0.0   ;;  %s646_s3 = inlined_call_operand.vmem [shape: f32[4,8], index: 3, kind: input, shape index: {}]   ;;  %s647_s0 = inlined_call_operand.vmem [shape: f32[128,5], index: 0, kind: input, shape index: {}]   ;;  %s648_s1 = inlined_call_operand.vmem [shape: f32[1,128], index: 1, kind: input, shape index: {}]   ;;  %s649_s2 = inlined_call_operand.<no memory space> [shape: f32[1,1], index: 2, kind: input, shape index: {}]   ;;  %s650_s4 = inlined_call_operand.vmem [shape: f32[1,128], index: 4, kind: output, shape index: {}]  }
   0x1   :  { %v34_v0 = vld [vmem:[%s646_s3] sm:$0xf]  ;;  %v19_v2 = vld [vmem:[%s647_s0 + $0x8] sm:$0xff]  ;;  %531 = vset.pattern.permute.xlu0 %v533_v3  ;;  %532 = vset.pattern.permute.xlu1 %v533_v3  ;;  %v20_v4 = vld [vmem:[%s647_s0 + $0x10] sm:$0xff]  ;;  %vm535_vm2 = vmmov 0   ;;  %v536_v19 = vmov 0.0  }
   0x2   :  { %v18_v1 = vld [vmem:[%s647_s0] sm:$0xff]  ;;  %442 = vmatprep.subr.msk.mxu0 %vm148_vm0, %v34_v0  ;;  %47 = vperm.xlu1 %532, %v20_v4   ;;  %v21_v5 = vld [vmem:[%s647_s0 + $0x18] sm:$0xff]  ;;  %v23_v7 = vld [vmem:[%s647_s0 + $0x28] sm:$0xff] }
   0x3   :  { %444 = vmatprep.mubr.msk.f32.mxu0 %vm115_vm1, %v18_v1  ;;  %443 = vmatpush3.msk.msra.mxu0 %vm148_vm0, %v34_v0  ;;  %v22_v6 = vld [vmem:[%s647_s0 + $0x20] sm:$0xff]  ;;  %v24_v8 = vld [vmem:[%s647_s0 + $0x30] sm:$0xff]  ;;  %v25_v9 = vld [vmem:[%s647_s0 + $0x38] sm:$0xff] }
   0x4   :  { %37 = vperm.xlu0 %531, %v18_v1   ;;  %445 = vmatmul.mubr.msk.f32.vlgmr.msra.gmra.mrb[0].mxu0 %vm115_vm1, %v19_v2  ;;  %v26_v10 = vld [vmem:[%s647_s0 + $0x40] sm:$0xff]  ;;  %v27_v11 = vld [vmem:[%s647_s0 + $0x48] sm:$0xff]  ;;  %v28_v12 = vld [vmem:[%s647_s0 + $0x50] sm:$0xff] }
   0x5   :  { %447 = vmatprep.mubr.msk.f32.mxu0 %vm115_vm1, %v20_v4  ;;  %v29_v13 = vld [vmem:[%s647_s0 + $0x58] sm:$0xff]  ;;  %v30_v14 = vld [vmem:[%s647_s0 + $0x60] sm:$0xff]  ;;  %v31_v15 = vld [vmem:[%s647_s0 + $0x68] sm:$0xff]  ;;  %503 = vmatprep.subr.bf16.mxu1 %v534_v18 }
   0x6   :  { %52 = vperm.xlu1 %532, %v21_v5   ;;  %v32_v16 = vld [vmem:[%s647_s0 + $0x70] sm:$0xff]  ;;  %v33_v17 = vld [vmem:[%s647_s0 + $0x78] sm:$0xff]  ;;  %500 = vmatprep.mubr.msk.f32.mxu1 %vm535_vm2, %v536_v19 }
   0x8   :  { %42 = vperm.xlu0 %531, %v19_v2   ;;  %448 = vmatmul.mubr.msk.f32.gmra.mrb[2].mxu0 %vm115_vm1, %v21_v5 }
   0x9   :  { %450 = vmatprep.mubr.msk.f32.mxu0 %vm115_vm1, %v22_v6 }
   0xa   :  { %62 = vperm.xlu1 %532, %v23_v7  }
   0xc   :  { %57 = vperm.xlu0 %531, %v22_v6   ;;  %451 = vmatmul.mubr.msk.f32.gmra.mrb[4].mxu0 %vm115_vm1, %v23_v7 }
   0xd   :  { %453 = vmatprep.mubr.msk.f32.mxu0 %vm115_vm1, %v24_v8 }
   0xe   :  { %72 = vperm.xlu1 %532, %v25_v9  }
  0x10   :  { %67 = vperm.xlu0 %531, %v24_v8   ;;  %454 = vmatmul.mubr.msk.f32.gmra.mrb[6].mxu0 %vm115_vm1, %v25_v9 }
  0x11   :  { %456 = vmatprep.mubr.msk.f32.mxu0 %vm115_vm1, %v26_v10 }
  0x12   :  { %82 = vperm.xlu1 %532, %v27_v11  }
  0x14   :  { %77 = vperm.xlu0 %531, %v26_v10   ;;  %457 = vmatmul.mubr.msk.f32.gmra.mrb[8].mxu0 %vm115_vm1, %v27_v11 }
  0x15   :  { %459 = vmatprep.mubr.msk.f32.mxu0 %vm115_vm1, %v28_v12 }
  0x16   :  { %92 = vperm.xlu1 %532, %v29_v13  }
  0x18   :  { %87 = vperm.xlu0 %531, %v28_v12   ;;  %460 = vmatmul.mubr.msk.f32.gmra.mrb[10].mxu0 %vm115_vm1, %v29_v13 }
  0x19   :  { %462 = vmatprep.mubr.msk.f32.mxu0 %vm115_vm1, %v30_v14 }
  0x1a   :  { %102 = vperm.xlu1 %532, %v31_v15  }
  0x1c   :  { %97 = vperm.xlu0 %531, %v30_v14   ;;  %463 = vmatmul.mubr.msk.f32.gmra.mrb[12].mxu0 %vm115_vm1, %v31_v15 }
  0x1d   :  { %465 = vmatprep.mubr.msk.f32.mxu0 %vm115_vm1, %v32_v16 }
  0x1e   :  { %112 = vperm.xlu1 %532, %v33_v17  }
  0x20   :  { %107 = vperm.xlu0 %531, %v32_v16   ;;  %466 = vmatmul.mubr.msk.f32.gmra.mrb[14].mxu0 %vm115_vm1, %v33_v17 }
  0x81   :  { %v48_v20 = vpop.permute.xlu1 %47 }
  0x83   :  { %v38_v21 = vpop.permute.xlu0 %37 }
  0x85   :  { %v53_v22 = vpop.permute.xlu1 %52 }
  0x87   :  { %v43_v23 = vpop.permute.xlu0 %42 }
  0x89   :  { %v63_v24 = vpop.permute.xlu1 %62 }
  0x8b   :  { %v58_v25 = vpop.permute.xlu0 %57 }
  0x8d   :  { %v73_v31 = vpop.permute.xlu1 %72 }
  0x8f   :  { %v68_v34 = vpop.permute.xlu0 %67 }
  0x91   :  { %v83_v44 = vpop.permute.xlu1 %82 }
  0x93   :  { %v78_v47 = vpop.permute.xlu0 %77 }
  0x95   :  { %v93_v56 = vpop.permute.xlu1 %92 }
  0x97   :  { %v88_v59 = vpop.permute.xlu0 %87 }
  0x99   :  { %v103_v5 = vpop.permute.xlu1 %102 }
  0x9b   :  { %v98_v8 = vpop.permute.xlu0 %97 }
  0x9d   :  { %v113_v17 = vpop.permute.xlu1 %112 }
  0xd7   :  { %v446_v26 = vpop.f32.mrb[0].mxu0 }
  0xd8   :  { %v224_v27 = vadd.f32 %v446_v26, %v43_v23  ;;  %v218_v28 = vpop.f32.mrb[1].mxu0 }
  0xd9   :  { %v219_v29 = vadd.f32 %v218_v28, %v38_v21  ;;  %v108_v21 = vpop.permute.xlu0 %107 }
  0xda   :  { %v298_v30 = vmax.f32 %v224_v27, 0.0 }
  0xdb   :  { %v297_v32 = vmax.f32 %v219_v29, 0.0  ;;  %v449_v33 = vpop.f32.mrb[2].mxu0  ;;  %v313_v29 = vld [vmem:[%s648_s1] sm:$0x1] }
  0xdc   :  { %v234_v35 = vadd.f32 %v449_v33, %v53_v22  ;;  %v228_v36 = vpop.f32.mrb[3].mxu0 }
  0xdd   :  { %v229_v37 = vadd.f32 %v228_v36, %v48_v20  ;;  %v504_v38 = vpack.c.bf16 %v298_v30, %v297_v32  ;;  %v315_v30 = vstv %s649_s2 }
  0xde   :  { %v300_v39 = vmax.f32 %v234_v35, 0.0 }
  0xdf   :  { %v299_v40 = vmax.f32 %v229_v37, 0.0  ;;  %v452_v41 = vpop.f32.mrb[4].mxu0  ;;  %505 = vmatpush3.bf16.msra.mxu1 %v504_v38 }
  0xe0   :  { %v244_v42 = vadd.f32 %v452_v41, %v63_v24  ;;  %v238_v43 = vpop.f32.mrb[5].mxu0  ;;  %506 = vmatprep.subr.bf16.mxu1 %v534_v18 }
  0xe1   :  { %v507_v45 = vpack.c.bf16 %v300_v39, %v299_v40  ;;  %v239_v46 = vadd.f32 %v238_v43, %v58_v25 }
  0xe2   :  { %v302_v48 = vmax.f32 %v244_v42, 0.0 }
  0xe3   :  { %v301_v49 = vmax.f32 %v239_v46, 0.0  ;;  %v455_v50 = vpop.f32.mrb[6].mxu0  ;;  %508 = vmatpush3.bf16.msra.mxu1 %v507_v45 }
  0xe4   :  { %v254_v51 = vadd.f32 %v455_v50, %v73_v31  ;;  %v248_v52 = vpop.f32.mrb[7].mxu0  ;;  %509 = vmatprep.subr.bf16.mxu1 %v534_v18 }
  0xe5   :  { %v510_v53 = vpack.c.bf16 %v302_v48, %v301_v49  ;;  %v249_v54 = vadd.f32 %v248_v52, %v68_v34 }
  0xe6   :  { %v304_v55 = vmax.f32 %v254_v51, 0.0 }
  0xe7   :  { %v303_v57 = vmax.f32 %v249_v54, 0.0  ;;  %v458_v58 = vpop.f32.mrb[8].mxu0  ;;  %511 = vmatpush3.bf16.msra.mxu1 %v510_v53 }
  0xe8   :  { %v264_v60 = vadd.f32 %v458_v58, %v83_v44  ;;  %v258_v61 = vpop.f32.mrb[9].mxu0  ;;  %512 = vmatprep.subr.bf16.mxu1 %v534_v18 }
  0xe9   :  { %v513_v62 = vpack.c.bf16 %v304_v55, %v303_v57  ;;  %v259_v63 = vadd.f32 %v258_v61, %v78_v47 }
  0xea   :  { %v306_v0 = vmax.f32 %v264_v60, 0.0 }
  0xeb   :  { %v305_v1 = vmax.f32 %v259_v63, 0.0  ;;  %v461_v2 = vpop.f32.mrb[10].mxu0  ;;  %514 = vmatpush3.bf16.msra.mxu1 %v513_v62 }
  0xec   :  { %v274_v3 = vadd.f32 %v461_v2, %v93_v56  ;;  %v268_v4 = vpop.f32.mrb[11].mxu0  ;;  %515 = vmatprep.subr.bf16.mxu1 %v534_v18 }
  0xed   :  { %v516_v6 = vpack.c.bf16 %v306_v0, %v305_v1  ;;  %v269_v7 = vadd.f32 %v268_v4, %v88_v59 }
  0xee   :  { %v308_v9 = vmax.f32 %v274_v3, 0.0 }
  0xef   :  { %v307_v10 = vmax.f32 %v269_v7, 0.0  ;;  %v464_v11 = vpop.f32.mrb[12].mxu0  ;;  %517 = vmatpush3.bf16.msra.mxu1 %v516_v6 }
  0xf0   :  { %v284_v12 = vadd.f32 %v464_v11, %v103_v5  ;;  %v278_v13 = vpop.f32.mrb[13].mxu0  ;;  %518 = vmatprep.subr.bf16.mxu1 %v534_v18 }
  0xf1   :  { %v519_v14 = vpack.c.bf16 %v308_v9, %v307_v10  ;;  %v279_v15 = vadd.f32 %v278_v13, %v98_v8 }
  0xf2   :  { %v310_v16 = vmax.f32 %v284_v12, 0.0 }
  0xf3   :  { %v309_v19 = vmax.f32 %v279_v15, 0.0  ;;  %v467_v20 = vpop.f32.mrb[14].mxu0  ;;  %520 = vmatpush3.bf16.msra.mxu1 %v519_v14 }
  0xf4   :  { %v294_v22 = vadd.f32 %v467_v20, %v113_v17  ;;  %v288_v23 = vpop.f32.mrb[15].mxu0  ;;  %521 = vmatprep.subr.bf16.mxu1 %v534_v18 }
  0xf5   :  { %v522_v24 = vpack.c.bf16 %v310_v16, %v309_v19  ;;  %v289_v25 = vadd.f32 %v288_v23, %v108_v21 }
  0xf6   :  { %v312_v26 = vmax.f32 %v294_v22, 0.0 }
  0xf7   :  { %v311_v27 = vmax.f32 %v289_v25, 0.0  ;;  %523 = vmatpush3.bf16.msra.mxu1 %v522_v24 }
  0xf8   :  { %524 = vmatprep.subr.bf16.mxu1 %v534_v18 }
  0xf9   :  { %v525_v28 = vpack.c.bf16 %v312_v26, %v311_v27 }
  0xfb   :  { %526 = vmatpush3.bf16.msra.mxu1 %v525_v28 }
  0xfe   :  { %501 = vmatmul.mubr.f32.vlgmr.msra.gmra.mrb[0].mxu1 %v313_v29 }
 0x1d1   :  { %v382_v31 = vpop.f32.mrb[0].mxu1 }
 0x1d2   :  { %v383_v32 = vadd.f32 %v382_v31, %v315_v30  ;;  %v502_v33 = vpop.f32.mrb[1].mxu1 }
 0x1d4   :  { %386 = vst [vmem:[%s650_s4] sm:$0x1] %v383_v32 }

</bundles_post_ra>
